<compile_context>
chip_gen: v6e
topology: v6e:2x2x1
jax: 0.10.0
libtpu: 0.0.40
codegen_flags: <defaults>
</compile_context>

<pallas_src>
import jax
import jax.numpy as jnp
from jax.experimental import pallas as pl
from jax.experimental.pallas import tpu as pltpu

LANE = 128          # TPU lane width: keep every matmul output lane-dense
TM_MAX = 512        # batch-tile cap: safe for v5e's 16 MiB scoped VMEM default


def _round_up(x, m):
    return (x + m - 1) // m * m


def _mlp_kernel(x_ref,
                w1_ref, b1_ref,
                w2_ref, b2_ref,
                w3_ref, b3_ref,
                w4_ref, b4_ref,
                w5_ref, b5_ref,
                o_ref):
    # Layer 1: Linear(input_dim, 256) + ReLU  (bf16 x bf16 -> f32 accumulate)
    h = jnp.dot(x_ref[...], w1_ref[...], preferred_element_type=jnp.float32)
    h = jnp.maximum(h + b1_ref[...], 0.0).astype(jnp.bfloat16)
    # Layer 2: Linear(256, 128) + ReLU
    h = jnp.dot(h, w2_ref[...], preferred_element_type=jnp.float32)
    h = jnp.maximum(h + b2_ref[...], 0.0).astype(jnp.bfloat16)
    # Layer 3: Linear(128, 32->padded 128) + ReLU
    h = jnp.dot(h, w3_ref[...], preferred_element_type=jnp.float32)
    h = jnp.maximum(h + b3_ref[...], 0.0).astype(jnp.bfloat16)
    # Layer 4: Linear(32, 8 -> padded 128) + ReLU
    h = jnp.dot(h, w4_ref[...], preferred_element_type=jnp.float32)
    h = jnp.maximum(h + b4_ref[...], 0.0).astype(jnp.bfloat16)
    # Layer 5: Linear(8, output_dim -> padded 128), no ReLU
    h = jnp.dot(h, w5_ref[...], preferred_element_type=jnp.float32) + b5_ref[...]
    o_ref[...] = h.astype(o_ref.dtype)


def init_params(key, input_dim, output_dim=2):
    """Deterministic init mimicking nn.Linear's default U(-1/sqrt(fan_in), ...).

    Weights are stored (in_features, out_features), biases (1, out_features),
    both float32 (master copies)."""
    dims = [input_dim, 256, 128, 32, 8, output_dim]
    params = []
    for i in range(len(dims) - 1):
        key, kw, kb = jax.random.split(key, 3)
        fan_in = dims[i]
        bound = 1.0 / (fan_in ** 0.5)
        w = jax.random.uniform(kw, (dims[i], dims[i + 1]), jnp.float32, -bound, bound)
        b = jax.random.uniform(kb, (1, dims[i + 1]), jnp.float32, -bound, bound)
        params.append((w, b))
    return params


def _prepare_kernel_params(params):
    """Zero-pad narrow output dims to multiples of 128 lanes and cast weights
    to bf16 (biases stay f32 for the f32 bias-add/ReLU). Padding is exact
    zeros, so the real output columns are unchanged."""
    prepared = []
    prev_out_p = None
    for w, b in params:
        d_in, d_out = w.shape
        in_p = d_in if prev_out_p is None else prev_out_p
        out_p = _round_up(d_out, LANE)
        w_p = jnp.zeros((in_p, out_p), jnp.float32).at[:d_in, :d_out].set(w)
        b_p = jnp.zeros((1, out_p), jnp.float32).at[:, :d_out].set(b)
        prepared.append((w_p.astype(jnp.bfloat16), b_p))
        prev_out_p = out_p
    return prepared


def full_connect_forward(image, params, *, tm_max=TM_MAX):
    """image: (N, C, H, W) float32 -> logits (N, output_dim) float32."""
    n = image.shape[0]
    x = image.reshape(n, -1)            # == torch flatten(1), row-major
    input_dim = x.shape[1]
    out_dim = params[-1][0].shape[1]

    kparams = _prepare_kernel_params(params)
    out_padded = kparams[-1][0].shape[1]

    # Batch tile: multiple of 16 (bf16 sublane packing), capped for VMEM.
    tm = min(tm_max, _round_up(max(n, 1), 16))
    n_pad = _round_up(n, tm)

    x = x.astype(jnp.bfloat16)
    if n_pad != n:
        x = jnp.pad(x, ((0, n_pad - n), (0, 0)))   # padded rows sliced off below

    grid = (n_pad // tm,)

    flat_params = []
    in_specs = [pl.BlockSpec((tm, input_dim), lambda i: (i, 0))]
    for w, b in kparams:
        flat_params += [w, b]
        # Constant index_map -> weights/biases stay resident in VMEM across steps.
        in_specs.append(pl.BlockSpec(w.shape, lambda i: (0, 0)))
        in_specs.append(pl.BlockSpec(b.shape, lambda i: (0, 0)))
    out_spec = pl.BlockSpec((tm, out_padded), lambda i: (i, 0))

    dims = [input_dim] + [w.shape[1] for w, _ in kparams]
    flops = 2 * n_pad * sum(a * b for a, b in zip(dims[:-1], dims[1:]))
    bytes_accessed = (
        x.size * x.dtype.itemsize
        + sum(w.size * w.dtype.itemsize + b.size * b.dtype.itemsize
              for w, b in kparams)
        + n_pad * out_padded * 4)

    out = pl.pallas_call(
        _mlp_kernel,
        out_shape=jax.ShapeDtypeStruct((n_pad, out_padded), jnp.float32),
        grid=grid,
        in_specs=in_specs,
        out_specs=out_spec,
        compiler_params=pltpu.CompilerParams(
            dimension_semantics=("parallel",)),
        cost_estimate=pl.CostEstimate(
            flops=flops, bytes_accessed=bytes_accessed, transcendentals=0),
    )(x, *flat_params)

    return out[:n, :out_dim]


def _reference_forward(image, params):
    """Plain-JAX reference mirroring the kernel's dtype choices
    (bf16 weights/activations, f32 accumulation)."""
    n = image.shape[0]
    h = image.reshape(n, -1).astype(jnp.bfloat16)
    for i, (w, b) in enumerate(params):
        h = jnp.dot(h, w.astype(jnp.bfloat16),
                    preferred_element_type=jnp.float32) + b
        if i < len(params) - 1:
            h = jnp.maximum(h, 0.0).astype(jnp.bfloat16)
    return h


if __name__ == "__main__":
    key = jax.random.PRNGKey(0)
    k_img, k_params = jax.random.split(key)

    # Small shapes consistent with the module: batch=2, channels=4, spatial=16
    # => flattened input_dim = 4*16*16 = 1024, output_dim = 2.
    N, C, H, W = 2, 4, 16, 16
    input_dim = C * H * W
    output_dim = 2

    image = jax.random.normal(k_img, (N, C, H, W), jnp.float32)
    params = init_params(k_params, input_dim, output_dim)

    out = full_connect_forward(image, params)
    out = jax.block_until_ready(out)

    ref = _reference_forward(image, params)
    assert out.shape == (N, output_dim), out.shape
    assert jnp.allclose(out, ref, atol=1e-2, rtol=1e-2), (out, ref)

    print("KERNEL_OK")
</pallas_src>

<mosaic_0001>
module attributes {stable_mosaic.version = 11 : i64} {
  func.func @_mlp_kernel(%arg0: i32, %arg1: memref<16x1024xbf16, #tpu.memory_space<vmem>>, %arg2: memref<1024x256xbf16, #tpu.memory_space<vmem>>, %arg3: memref<1x256xf32, #tpu.memory_space<vmem>>, %arg4: memref<256x128xbf16, #tpu.memory_space<vmem>>, %arg5: memref<1x128xf32, #tpu.memory_space<vmem>>, %arg6: memref<128x128xbf16, #tpu.memory_space<vmem>>, %arg7: memref<1x128xf32, #tpu.memory_space<vmem>>, %arg8: memref<128x128xbf16, #tpu.memory_space<vmem>>, %arg9: memref<1x128xf32, #tpu.memory_space<vmem>>, %arg10: memref<128x128xbf16, #tpu.memory_space<vmem>>, %arg11: memref<1x128xf32, #tpu.memory_space<vmem>>, %arg12: memref<16x128xf32, #tpu.memory_space<vmem>>) attributes {dimension_semantics = [#tpu.dimension_semantics<parallel>], iteration_bounds = array<i64: 1>, scalar_prefetch = 0 : i64, scratch_operands = 0 : i64, tpu.core_type = #tpu.core_type<tc>, window_params = [{transform_indices = @transform_0, window_bounds = array<i64: 16, 1024>}, {pipeline_mode = #tpu.pipeline_mode<synchronous>, transform_indices = @transform_1, window_bounds = array<i64: 1024, 256>}, {pipeline_mode = #tpu.pipeline_mode<synchronous>, transform_indices = @transform_2, window_bounds = array<i64: 1, 256>}, {pipeline_mode = #tpu.pipeline_mode<synchronous>, transform_indices = @transform_3, window_bounds = array<i64: 256, 128>}, {pipeline_mode = #tpu.pipeline_mode<synchronous>, transform_indices = @transform_4, window_bounds = array<i64: 1, 128>}, {pipeline_mode = #tpu.pipeline_mode<synchronous>, transform_indices = @transform_5, window_bounds = array<i64: 128, 128>}, {pipeline_mode = #tpu.pipeline_mode<synchronous>, transform_indices = @transform_6, window_bounds = array<i64: 1, 128>}, {pipeline_mode = #tpu.pipeline_mode<synchronous>, transform_indices = @transform_7, window_bounds = array<i64: 128, 128>}, {pipeline_mode = #tpu.pipeline_mode<synchronous>, transform_indices = @transform_8, window_bounds = array<i64: 1, 128>}, {pipeline_mode = #tpu.pipeline_mode<synchronous>, transform_indices = @transform_9, window_bounds = array<i64: 128, 128>}, {pipeline_mode = #tpu.pipeline_mode<synchronous>, transform_indices = @transform_10, window_bounds = array<i64: 1, 128>}, {transform_indices = @transform_11, window_bounds = array<i64: 16, 128>}]} {
    %c0 = arith.constant 0 : index
    %c0_0 = arith.constant 0 : index
    %0 = vector.load %arg1[%c0, %c0_0] : memref<16x1024xbf16, #tpu.memory_space<vmem>>, vector<16x1024xbf16>
    %c0_1 = arith.constant 0 : index
    %c0_2 = arith.constant 0 : index
    %1 = vector.load %arg2[%c0_1, %c0_2] : memref<1024x256xbf16, #tpu.memory_space<vmem>>, vector<1024x256xbf16>
    %cst = arith.constant dense<0.000000e+00> : vector<16x256xf32>
    %2 = tpu.matmul %0, %1, %cst {dimension_numbers = #tpu.dot_dimension_numbers<[1], [0], [0], [1], [0, 0, 1, 1], [], []>} : vector<16x1024xbf16>, vector<1024x256xbf16>, vector<16x256xf32> -> vector<16x256xf32>
    %c0_3 = arith.constant 0 : index
    %c0_4 = arith.constant 0 : index
    %3 = vector.load %arg3[%c0_3, %c0_4] : memref<1x256xf32, #tpu.memory_space<vmem>>, vector<1x256xf32>
    %4 = vector.broadcast %3 : vector<1x256xf32> to vector<16x256xf32>
    %5 = arith.addf %2, %4 : vector<16x256xf32>
    %cst_5 = arith.constant 0.000000e+00 : f32
    %6 = vector.broadcast %cst_5 : f32 to vector<16x256xf32>
    %7 = arith.maximumf %5, %6 : vector<16x256xf32>
    %8 = arith.truncf %7 : vector<16x256xf32> to vector<16x256xbf16>
    %c0_6 = arith.constant 0 : index
    %c0_7 = arith.constant 0 : index
    %9 = vector.load %arg4[%c0_6, %c0_7] : memref<256x128xbf16, #tpu.memory_space<vmem>>, vector<256x128xbf16>
    %cst_8 = arith.constant dense<0.000000e+00> : vector<16x128xf32>
    %10 = tpu.matmul %8, %9, %cst_8 {dimension_numbers = #tpu.dot_dimension_numbers<[1], [0], [0], [1], [0, 0, 1, 1], [], []>} : vector<16x256xbf16>, vector<256x128xbf16>, vector<16x128xf32> -> vector<16x128xf32>
    %c0_9 = arith.constant 0 : index
    %c0_10 = arith.constant 0 : index
    %11 = vector.load %arg5[%c0_9, %c0_10] : memref<1x128xf32, #tpu.memory_space<vmem>>, vector<1x128xf32>
    %12 = vector.broadcast %11 : vector<1x128xf32> to vector<16x128xf32>
    %13 = arith.addf %10, %12 : vector<16x128xf32>
    %cst_11 = arith.constant 0.000000e+00 : f32
    %14 = vector.broadcast %cst_11 : f32 to vector<16x128xf32>
    %15 = arith.maximumf %13, %14 : vector<16x128xf32>
    %16 = arith.truncf %15 : vector<16x128xf32> to vector<16x128xbf16>
    %c0_12 = arith.constant 0 : index
    %c0_13 = arith.constant 0 : index
    %17 = vector.load %arg6[%c0_12, %c0_13] : memref<128x128xbf16, #tpu.memory_space<vmem>>, vector<128x128xbf16>
    %cst_14 = arith.constant dense<0.000000e+00> : vector<16x128xf32>
    %18 = tpu.matmul %16, %17, %cst_14 {dimension_numbers = #tpu.dot_dimension_numbers<[1], [0], [0], [1], [0, 0, 1, 1], [], []>} : vector<16x128xbf16>, vector<128x128xbf16>, vector<16x128xf32> -> vector<16x128xf32>
    %c0_15 = arith.constant 0 : index
    %c0_16 = arith.constant 0 : index
    %19 = vector.load %arg7[%c0_15, %c0_16] : memref<1x128xf32, #tpu.memory_space<vmem>>, vector<1x128xf32>
    %20 = vector.broadcast %19 : vector<1x128xf32> to vector<16x128xf32>
    %21 = arith.addf %18, %20 : vector<16x128xf32>
    %cst_17 = arith.constant 0.000000e+00 : f32
    %22 = vector.broadcast %cst_17 : f32 to vector<16x128xf32>
    %23 = arith.maximumf %21, %22 : vector<16x128xf32>
    %24 = arith.truncf %23 : vector<16x128xf32> to vector<16x128xbf16>
    %c0_18 = arith.constant 0 : index
    %c0_19 = arith.constant 0 : index
    %25 = vector.load %arg8[%c0_18, %c0_19] : memref<128x128xbf16, #tpu.memory_space<vmem>>, vector<128x128xbf16>
    %cst_20 = arith.constant dense<0.000000e+00> : vector<16x128xf32>
    %26 = tpu.matmul %24, %25, %cst_20 {dimension_numbers = #tpu.dot_dimension_numbers<[1], [0], [0], [1], [0, 0, 1, 1], [], []>} : vector<16x128xbf16>, vector<128x128xbf16>, vector<16x128xf32> -> vector<16x128xf32>
    %c0_21 = arith.constant 0 : index
    %c0_22 = arith.constant 0 : index
    %27 = vector.load %arg9[%c0_21, %c0_22] : memref<1x128xf32, #tpu.memory_space<vmem>>, vector<1x128xf32>
    %28 = vector.broadcast %27 : vector<1x128xf32> to vector<16x128xf32>
    %29 = arith.addf %26, %28 : vector<16x128xf32>
    %cst_23 = arith.constant 0.000000e+00 : f32
    %30 = vector.broadcast %cst_23 : f32 to vector<16x128xf32>
    %31 = arith.maximumf %29, %30 : vector<16x128xf32>
    %32 = arith.truncf %31 : vector<16x128xf32> to vector<16x128xbf16>
    %c0_24 = arith.constant 0 : index
    %c0_25 = arith.constant 0 : index
    %33 = vector.load %arg10[%c0_24, %c0_25] : memref<128x128xbf16, #tpu.memory_space<vmem>>, vector<128x128xbf16>
    %cst_26 = arith.constant dense<0.000000e+00> : vector<16x128xf32>
    %34 = tpu.matmul %32, %33, %cst_26 {dimension_numbers = #tpu.dot_dimension_numbers<[1], [0], [0], [1], [0, 0, 1, 1], [], []>} : vector<16x128xbf16>, vector<128x128xbf16>, vector<16x128xf32> -> vector<16x128xf32>
    %c0_27 = arith.constant 0 : index
    %c0_28 = arith.constant 0 : index
    %35 = vector.load %arg11[%c0_27, %c0_28] : memref<1x128xf32, #tpu.memory_space<vmem>>, vector<1x128xf32>
    %36 = vector.broadcast %35 : vector<1x128xf32> to vector<16x128xf32>
    %37 = arith.addf %34, %36 : vector<16x128xf32>
    %c0_29 = arith.constant 0 : index
    %c0_30 = arith.constant 0 : index
    %38 = vector.load %arg12[%c0_29, %c0_30] : memref<16x128xf32, #tpu.memory_space<vmem>>, vector<16x128xf32>
    tpu.vector_store %arg12[%c0_29, %c0_30], %37 {strides = array<i32>} : memref<16x128xf32, #tpu.memory_space<vmem>>, vector<16x128xf32>,
    return
  }
  func.func @transform_0(%arg0: i32) -> (i32, i32) {
    %c0_i32 = arith.constant 0 : i32
    %c0_i32_0 = arith.constant 0 : i32
    return %arg0, %c0_i32 : i32, i32
  }
  func.func @transform_1(%arg0: i32) -> (i32, i32) {
    %c0_i32 = arith.constant 0 : i32
    %c0_i32_0 = arith.constant 0 : i32
    %c0_i32_1 = arith.constant 0 : i32
    return %c0_i32, %c0_i32_0 : i32, i32
  }
  func.func @transform_2(%arg0: i32) -> (i32, i32) {
    %c0_i32 = arith.constant 0 : i32
    %c0_i32_0 = arith.constant 0 : i32
    %c0_i32_1 = arith.constant 0 : i32
    return %c0_i32, %c0_i32_0 : i32, i32
  }
  func.func @transform_3(%arg0: i32) -> (i32, i32) {
    %c0_i32 = arith.constant 0 : i32
    %c0_i32_0 = arith.constant 0 : i32
    %c0_i32_1 = arith.constant 0 : i32
    return %c0_i32, %c0_i32_0 : i32, i32
  }
  func.func @transform_4(%arg0: i32) -> (i32, i32) {
    %c0_i32 = arith.constant 0 : i32
    %c0_i32_0 = arith.constant 0 : i32
    %c0_i32_1 = arith.constant 0 : i32
    return %c0_i32, %c0_i32_0 : i32, i32
  }
  func.func @transform_5(%arg0: i32) -> (i32, i32) {
    %c0_i32 = arith.constant 0 : i32
    %c0_i32_0 = arith.constant 0 : i32
    %c0_i32_1 = arith.constant 0 : i32
    return %c0_i32, %c0_i32_0 : i32, i32
  }
  func.func @transform_6(%arg0: i32) -> (i32, i32) {
    %c0_i32 = arith.constant 0 : i32
    %c0_i32_0 = arith.constant 0 : i32
    %c0_i32_1 = arith.constant 0 : i32
    return %c0_i32, %c0_i32_0 : i32, i32
  }
  func.func @transform_7(%arg0: i32) -> (i32, i32) {
    %c0_i32 = arith.constant 0 : i32
    %c0_i32_0 = arith.constant 0 : i32
    %c0_i32_1 = arith.constant 0 : i32
    return %c0_i32, %c0_i32_0 : i32, i32
  }
  func.func @transform_8(%arg0: i32) -> (i32, i32) {
    %c0_i32 = arith.constant 0 : i32
    %c0_i32_0 = arith.constant 0 : i32
    %c0_i32_1 = arith.constant 0 : i32
    return %c0_i32, %c0_i32_0 : i32, i32
  }
  func.func @transform_9(%arg0: i32) -> (i32, i32) {
    %c0_i32 = arith.constant 0 : i32
    %c0_i32_0 = arith.constant 0 : i32
    %c0_i32_1 = arith.constant 0 : i32
    return %c0_i32, %c0_i32_0 : i32, i32
  }
  func.func @transform_10(%arg0: i32) -> (i32, i32) {
    %c0_i32 = arith.constant 0 : i32
    %c0_i32_0 = arith.constant 0 : i32
    %c0_i32_1 = arith.constant 0 : i32
    return %c0_i32, %c0_i32_0 : i32, i32
  }
  func.func @transform_11(%arg0: i32) -> (i32, i32) {
    %c0_i32 = arith.constant 0 : i32
    %c0_i32_0 = arith.constant 0 : i32
    return %arg0, %c0_i32 : i32, i32
  }
}

</mosaic_0001>

<bundles_post_ra>
// kernel: tpu_custom_call.1
= control target key start
LH: loop header
LB: loop body
LE: loop exit
PB: predicated region body
PF: predicated region fallthrough
CT: control target
= control target key end

     0   :  { %16 = vsyncpa [#allocation3], 0  ;;  %s2532_s0 = inlined_call_operand.hbm [shape: bf16[16,1024], index: 0, kind: input, shape index: {}]   ;;  %s2533_s1 = inlined_call_operand.hbm [shape: bf16[1024,256], index: 1, kind: input, shape index: {}]   ;;  %s2534_s2 = inlined_call_operand.vmem [shape: f32[1,256], index: 2, kind: input, shape index: {}]   ;;  %s2535_s3 = inlined_call_operand.hbm [shape: bf16[256,128], index: 3, kind: input, shape index: {}]   ;;  %s2536_s4 = inlined_call_operand.vmem [shape: f32[1,128], index: 4, kind: input, shape index: {}]   ;;  %s2537_s5 = inlined_call_operand.hbm [shape: bf16[128,128], index: 5, kind: input, shape index: {}]   ;;  %s2538_s6 = inlined_call_operand.vmem [shape: f32[1,128], index: 6, kind: input, shape index: {}]   ;;  %s2539_s7 = inlined_call_operand.hbm [shape: bf16[128,128], index: 7, kind: input, shape index: {}]   ;;  %s2540_s8 = inlined_call_operand.vmem [shape: f32[1,128], index: 8, kind: input, shape index: {}]   ;;  %s2541_s9 = inlined_call_operand.hbm [shape: bf16[128,128], index: 9, kind: input, shape index: {}]   ;;  %s2542_s10 = inlined_call_operand.vmem [shape: f32[1,128], index: 10, kind: input, shape index: {}]   ;;  %s2543_s11 = inlined_call_operand.hbm [shape: f32[16,128], index: 11, kind: output, shape index: {}]  }
   0x1   :  { %17 = vsyncpa [#allocation6], 0 }
   0x2   :  { %18 = vsyncpa [#allocation9], 0 }
   0x3   :  { %19 = vsyncpa [#allocation12], 0 }
   0x4   :  { %20 = vsyncpa [#allocation4], 0  ;;  %s2357_s17 = smov [#allocation5]  }
   0x5   :  { %s38_s18 = sshll.u32 %s2357_s17, 4  ;;  %s39_s18 = int_to_ptr.vmem [resolvable:$true] %s38_s18 }
   0x6   :  { %s2215_s19 = scalar_lea.vmem %s39_s18, 16384  ;;  %p2220_p1 = scmp.lt.s32.totalorder %s39_s18, %s39_s18 }
   0x7   :  { %p2216_p0 = scmp.ne.s32.totalorder %s39_s18, %s2215_s19  ;;  %p2221_p2 = scmp.lt.s32.totalorder %s2215_s19, %s2215_s19 }
   0x9   :  { %p2222_p3 = por %p2221_p2, %p2220_p1 }
   0xb   :  { %p2223_p4 = pnand %p2222_p3, %p2216_p0 }
   0xd   :  { %2226 = shalt.err (!%p2223_p4)
}
   0xe   :  { %s2358_s20 = smov 128   ;;  %s2359_s21 = smov 8  }
   0xf   :  { %44 = dma.hbm_to_vmem [thread:$0]  %s2533_s1, 16384, %s39_s18, [#allocation6], %s2358_s20, %s2358_s20, %s2359_s21  }
  0x10   :  { %s2360_s24 = smov [#allocation8]   ;;  %s2361_s26 = smov [#allocation2]  }
  0x11   :  { %s66_s25 = sshll.u32 %s2360_s24, 4  ;;  %s26_s27 = sshll.u32 %s2361_s26, 4  ;;  %s67_s25 = int_to_ptr.vmem [resolvable:$true] %s66_s25  ;;  %s27_s27 = int_to_ptr.vmem [resolvable:$true] %s26_s27 }
  0x12   :  { %s2235_s28 = scalar_lea.vmem %s67_s25, 1024  ;;  %p2240_p6 = scmp.lt.s32.totalorder %s67_s25, %s67_s25 }
  0x13   :  { %p2236_p5 = scmp.ne.s32.totalorder %s67_s25, %s2235_s28  ;;  %p2241_p7 = scmp.lt.s32.totalorder %s2235_s28, %s2235_s28 }
  0x15   :  { %p2242_p8 = por %p2241_p7, %p2240_p6 }
  0x17   :  { %p2243_p9 = pnand %p2242_p8, %p2236_p5 }
  0x19   :  { %2246 = shalt.err (!%p2243_p9)
}
  0x1a   :  { %s2362_s29 = smov 64   ;;  %s2363_s30 = smov 4  }
  0x1b   :  { %72 = dma.hbm_to_vmem [thread:$0]  %s2537_s5, 1024, %s67_s25, [#allocation9], %s2362_s29, %s2362_s29, %s2363_s30  }
  0x1c   :  { %s2255_s1 = scalar_lea.vmem %s27_s27, 1024  ;;  %p2260_p11 = scmp.lt.s32.totalorder %s27_s27, %s27_s27 }
  0x1d   :  { %p2256_p10 = scmp.ne.s32.totalorder %s27_s27, %s2255_s1  ;;  %p2261_p12 = scmp.lt.s32.totalorder %s2255_s1, %s2255_s1 }
  0x1f   :  { %p2262_p13 = por %p2261_p12, %p2260_p11 }
  0x21   :  { %p2263_p0 = pnand %p2262_p13, %p2256_p10 }
  0x23   :  { %2266 = shalt.err (!%p2263_p0)
}
  0x24   :  { %s2364_s14 = smov 512   ;;  %s2365_s15 = smov 32  }
  0x25   :  { %32 = dma.hbm_to_vmem [thread:$0]  %s2532_s0, 1024, %s27_s27, [#allocation3], %s2364_s14, %s2364_s14, %s2365_s15  }
  0x26   :  { %s2366_s18 = smov [#allocation7]   ;;  %s2367_s22 = smov [#allocation10]  }
  0x27   :  { %s52_s19 = sshll.u32 %s2366_s18, 4  ;;  %s80_s23 = sshll.u32 %s2367_s22, 4  ;;  %s53_s19 = int_to_ptr.vmem [resolvable:$true] %s52_s19  ;;  %s81_s23 = int_to_ptr.vmem [resolvable:$true] %s80_s23 }
  0x28   :  { %s2275_s5 = scalar_lea.vmem %s53_s19, 2048  ;;  %p2280_p2 = scmp.lt.s32.totalorder %s53_s19, %s53_s19 }
  0x29   :  { %p2276_p1 = scmp.ne.s32.totalorder %s53_s19, %s2275_s5  ;;  %p2281_p3 = scmp.lt.s32.totalorder %s2275_s5, %s2275_s5 }
  0x2b   :  { %p2282_p4 = por %p2281_p3, %p2280_p2 }
  0x2d   :  { %p2283_p5 = pnand %p2282_p4, %p2276_p1 }
  0x2f   :  { %2286 = shalt.err (!%p2283_p5)
}
  0x30   :  { %58 = dma.hbm_to_vmem [thread:$0]  %s2535_s3, 2048, %s53_s19, [#allocation6], %s2362_s29, %s2362_s29, %s2363_s30  }
  0x31   :  { %s2295_s0 = scalar_lea.vmem %s81_s23, 1024  ;;  %p2300_p7 = scmp.lt.s32.totalorder %s81_s23, %s81_s23 }
  0x32   :  { %p2296_p6 = scmp.ne.s32.totalorder %s81_s23, %s2295_s0  ;;  %p2301_p8 = scmp.lt.s32.totalorder %s2295_s0, %s2295_s0 }
  0x34   :  { %p2302_p9 = por %p2301_p8, %p2300_p7 }
  0x36   :  { %p2303_p10 = pnand %p2302_p9, %p2296_p6 }
  0x38   :  { %2306 = shalt.err (!%p2303_p10)
}
  0x39   :  { %86 = dma.hbm_to_vmem [thread:$0]  %s2539_s7, 1024, %s81_s23, [#allocation9], %s2362_s29, %s2362_s29, %s2363_s30  }
  0x3a   :  { %s2368_s28 = smov [#allocation11]  }
  0x3b   :  { %s94_s12 = sshll.u32 %s2368_s28, 4  ;;  %s95_s12 = int_to_ptr.vmem [resolvable:$true] %s94_s12 }
  0x3c   :  { %s2315_s13 = scalar_lea.vmem %s95_s12, 1024  ;;  %p2320_p12 = scmp.lt.s32.totalorder %s95_s12, %s95_s12 }
  0x3d   :  { %p2316_p11 = scmp.ne.s32.totalorder %s95_s12, %s2315_s13  ;;  %p2321_p13 = scmp.lt.s32.totalorder %s2315_s13, %s2315_s13 }
  0x3f   :  { %p2322_p0 = por %p2321_p13, %p2320_p12 }
  0x41   :  { %p2323_p1 = pnand %p2322_p0, %p2316_p11 }
  0x43   :  { %2326 = shalt.err (!%p2323_p1)
}
  0x44   :  { %100 = dma.hbm_to_vmem [thread:$0]  %s2541_s9, 1024, %s95_s12, [#allocation12], %s2362_s29, %s2362_s29, %s2363_s30  }
  0x45   :  { %2347 = dma.done.wait [#allocation3], 1024  }
  0x46   :  { %2348 = vsyncadd [#allocation3], 4294966272 }
  0x47   :  { %2349 = dma.done.wait [#allocation6], 18432  }
  0x48   :  { %2350 = vsyncadd [#allocation6], 4294948864 }
  0x49   :  { %2351 = dma.done.wait [#allocation9], 2048  }
  0x4a   :  { %2352 = vsyncadd [#allocation9], 4294965248 }
  0x4b   :  { %2353 = dma.done.wait [#allocation12], 1024  }
  0x4c   :  { %2354 = vsyncadd [#allocation12], 4294966272  ;;  %v1975_v0 = vld [vmem:[#allocation5 + $0x74] ss:$8 sps:$4 sm:$0xff]   ;;  %v1979_v2 = vld [vmem:[#allocation5 + $0x70] ss:$8 sps:$4 sm:$0xff]  }
  0x4d   :  { %v1977_v1 = vld [vmem:[#allocation5 + $0x174] ss:$8 sps:$4 sm:$0xff]   ;;  %950 = vmatprep.subr.bf16.mxu0 %v1975_v0  ;;  %v1980_v3 = vld [vmem:[#allocation5 + $0x170] ss:$8 sps:$4 sm:$0xff]   ;;  %v1981_v4 = vld [vmem:[#allocation5 + $0x64] ss:$8 sps:$4 sm:$0xff]  }
  0x4e   :  { %993 = vmatprep.subr.bf16.mxu1 %v1977_v1  ;;  %951 = vmatpush1.bf16.msra.mxu0 %v1979_v2  ;;  %v1983_v5 = vld [vmem:[#allocation5 + $0x164] ss:$8 sps:$4 sm:$0xff]   ;;  %v1985_v6 = vld [vmem:[#allocation5 + $0x60] ss:$8 sps:$4 sm:$0xff]   ;;  %v1987_v8 = vld [vmem:[#allocation5 + $0x54] ss:$8 sps:$4 sm:$0xff]  }
  0x4f   :  { %994 = vmatpush1.bf16.msra.mxu1 %v1980_v3  ;;  %952 = vmatprep.subr.bf16.mxu0 %v1981_v4  ;;  %v1986_v7 = vld [vmem:[#allocation5 + $0x160] ss:$8 sps:$4 sm:$0xff]   ;;  %v1989_v9 = vld [vmem:[#allocation5 + $0x154] ss:$8 sps:$4 sm:$0xff]   ;;  %v1991_v10 = vld [vmem:[#allocation5 + $0x50] ss:$8 sps:$4 sm:$0xff]  }
  0x50   :  { %995 = vmatprep.subr.bf16.mxu1 %v1983_v5  ;;  %v1992_v11 = vld [vmem:[#allocation5 + $0x150] ss:$8 sps:$4 sm:$0xff]   ;;  %v1993_v12 = vld [vmem:[#allocation5 + $0x44] ss:$8 sps:$4 sm:$0xff]   ;;  %v1997_v14 = vld [vmem:[#allocation5 + $0x40] ss:$8 sps:$4 sm:$0xff]  }
  0x51   :  { %v1995_v13 = vld [vmem:[#allocation5 + $0x144] ss:$8 sps:$4 sm:$0xff]   ;;  %v1998_v15 = vld [vmem:[#allocation5 + $0x140] ss:$8 sps:$4 sm:$0xff]   ;;  %v1999_v16 = vld [vmem:[#allocation5 + $0x34] ss:$8 sps:$4 sm:$0xff]  }
  0x52   :  { %953 = vmatpush1.bf16.msra.mxu0 %v1985_v6  ;;  %v2001_v17 = vld [vmem:[#allocation5 + $0x134] ss:$8 sps:$4 sm:$0xff]   ;;  %v2003_v18 = vld [vmem:[#allocation5 + $0x30] ss:$8 sps:$4 sm:$0xff]   ;;  %v2005_v20 = vld [vmem:[#allocation5 + $0x24] ss:$8 sps:$4 sm:$0xff]  }
  0x53   :  { %996 = vmatpush1.bf16.msra.mxu1 %v1986_v7  ;;  %954 = vmatprep.subr.bf16.mxu0 %v1987_v8  ;;  %v2004_v19 = vld [vmem:[#allocation5 + $0x130] ss:$8 sps:$4 sm:$0xff]   ;;  %v2007_v21 = vld [vmem:[#allocation5 + $0x124] ss:$8 sps:$4 sm:$0xff]   ;;  %v2009_v22 = vld [vmem:[#allocation5 + $0x20] ss:$8 sps:$4 sm:$0xff]  }
  0x54   :  { %997 = vmatprep.subr.bf16.mxu1 %v1989_v9  ;;  %v2010_v23 = vld [vmem:[#allocation5 + $0x120] ss:$8 sps:$4 sm:$0xff]   ;;  %v2011_v24 = vld [vmem:[#allocation5 + $0x14] ss:$8 sps:$4 sm:$0xff]   ;;  %v2015_v26 = vld [vmem:[#allocation5 + $0x10] ss:$8 sps:$4 sm:$0xff]  }
  0x55   :  { %v2013_v25 = vld [vmem:[#allocation5 + $0x114] ss:$8 sps:$4 sm:$0xff]   ;;  %v2016_v27 = vld [vmem:[#allocation5 + $0x110] ss:$8 sps:$4 sm:$0xff]   ;;  %v2017_v28 = vld [vmem:[#allocation5 + $0x4] ss:$8 sps:$4 sm:$0xff]  }
  0x56   :  { %955 = vmatpush1.bf16.msra.mxu0 %v1991_v10  ;;  %v2019_v29 = vld [vmem:[#allocation5 + $0x104] ss:$8 sps:$4 sm:$0xff]   ;;  %v2021_v30 = vld [vmem:[#allocation5] ss:$8 sps:$4 sm:$0xff]   ;;  %v2023_v32 = vld [vmem:[#allocation5 + $0xf4] ss:$8 sps:$4 sm:$0xff]  }
  0x57   :  { %998 = vmatpush1.bf16.msra.mxu1 %v1992_v11  ;;  %956 = vmatprep.subr.bf16.mxu0 %v1993_v12  ;;  %v2022_v31 = vld [vmem:[#allocation5 + $0x100] ss:$8 sps:$4 sm:$0xff]   ;;  %v2025_v33 = vld [vmem:[#allocation5 + $0x1f4] ss:$8 sps:$4 sm:$0xff]   ;;  %v2027_v34 = vld [vmem:[#allocation5 + $0xf0] ss:$8 sps:$4 sm:$0xff]  }
  0x58   :  { %999 = vmatprep.subr.bf16.mxu1 %v1995_v13  ;;  %v2028_v35 = vld [vmem:[#allocation5 + $0x1f0] ss:$8 sps:$4 sm:$0xff]   ;;  %v2029_v36 = vld [vmem:[#allocation5 + $0xe4] ss:$8 sps:$4 sm:$0xff]   ;;  %v2033_v38 = vld [vmem:[#allocation5 + $0xe0] ss:$8 sps:$4 sm:$0xff]  }
  0x59   :  { %v2031_v37 = vld [vmem:[#allocation5 + $0x1e4] ss:$8 sps:$4 sm:$0xff]   ;;  %v2034_v39 = vld [vmem:[#allocation5 + $0x1e0] ss:$8 sps:$4 sm:$0xff]   ;;  %v2035_v40 = vld [vmem:[#allocation5 + $0xd4] ss:$8 sps:$4 sm:$0xff]  }
  0x5a   :  { %957 = vmatpush1.bf16.msra.mxu0 %v1997_v14  ;;  %v2037_v41 = vld [vmem:[#allocation5 + $0x1d4] ss:$8 sps:$4 sm:$0xff]   ;;  %v2039_v42 = vld [vmem:[#allocation5 + $0xd0] ss:$8 sps:$4 sm:$0xff]   ;;  %v2041_v44 = vld [vmem:[#allocation5 + $0xc4] ss:$8 sps:$4 sm:$0xff]  }
  0x5b   :  { %1000 = vmatpush1.bf16.msra.mxu1 %v1998_v15  ;;  %958 = vmatprep.subr.bf16.mxu0 %v1999_v16  ;;  %v2040_v43 = vld [vmem:[#allocation5 + $0x1d0] ss:$8 sps:$4 sm:$0xff]   ;;  %v2043_v45 = vld [vmem:[#allocation5 + $0x1c4] ss:$8 sps:$4 sm:$0xff]   ;;  %v2045_v46 = vld [vmem:[#allocation5 + $0xc0] ss:$8 sps:$4 sm:$0xff]  }
  0x5c   :  { %1001 = vmatprep.subr.bf16.mxu1 %v2001_v17  ;;  %v2046_v47 = vld [vmem:[#allocation5 + $0x1c0] ss:$8 sps:$4 sm:$0xff]   ;;  %v2047_v52 = vld [vmem:[#allocation5 + $0xb4] ss:$8 sps:$4 sm:$0xff]   ;;  %v2051_v56 = vld [vmem:[#allocation5 + $0xb0] ss:$8 sps:$4 sm:$0xff]  }
  0x5d   :  { %v122_v48 = vld [vmem:[#allocation2] sm:$0xff]  ;;  %v123_v50 = vld [vmem:[#allocation2 + $0x8] sm:$0xff]  ;;  %v2049_v54 = vld [vmem:[#allocation5 + $0x1b4] ss:$8 sps:$4 sm:$0xff]   ;;  %vm2370_vm0 = vmmov 0   ;;  %s2371_s17 = smov [#allocation13]  }
  0x5e   :  { %959 = vmatpush1.bf16.msra.mxu0 %v2003_v18  ;;  %v126_v49 = vld [vmem:[#allocation2 + $0x20] sm:$0xff]  ;;  %v127_v51 = vld [vmem:[#allocation2 + $0x28] sm:$0xff]  ;;  %v2052_v57 = vld [vmem:[#allocation5 + $0x1b0] ss:$8 sps:$4 sm:$0xff]   ;;  %s1656_s18 = sshll.u32 %s2371_s17, 4  ;;  %s1657_s18 = int_to_ptr.vmem [resolvable:$true] %s1656_s18 }
  0x5f   :  { %1002 = vmatpush1.bf16.msra.mxu1 %v2004_v19  ;;  %960 = vmatprep.subr.bf16.mxu0 %v2005_v20  ;;  %v1672_v53 = vcombine.high %v122_v48, %v126_v49  ;;  %v1674_v55 = vcombine.high %v123_v50, %v127_v51  ;;  %v2053_v58 = vld [vmem:[#allocation5 + $0xa4] ss:$8 sps:$4 sm:$0xff]   ;;  %v2057_v60 = vld [vmem:[#allocation5 + $0xa0] ss:$8 sps:$4 sm:$0xff]   ;;  %v2059_v62 = vld [vmem:[#allocation5 + $0x94] ss:$8 sps:$4 sm:$0xff]   ;;  %v1671_v8 = vcombine.low %v122_v48, %v126_v49  ;;  %p2332_p3 = scmp.lt.s32.totalorder %s1657_s18, %s1657_s18 }
  0x60   :  { %1003 = vmatprep.subr.bf16.mxu1 %v2007_v21  ;;  %v2055_v59 = vld [vmem:[#allocation5 + $0x1a4] ss:$8 sps:$4 sm:$0xff]   ;;  %v2058_v61 = vld [vmem:[#allocation5 + $0x1a0] ss:$8 sps:$4 sm:$0xff]   ;;  %v2061_v63 = vld [vmem:[#allocation5 + $0x194] ss:$8 sps:$4 sm:$0xff]   ;;  %v1673_v9 = vcombine.low %v123_v50, %v127_v51 }
  0x61   :  { %982 = vmatprep.mubr.bf16.mxu0 %v1672_v53  ;;  %1025 = vmatprep.mubr.bf16.mxu1 %v1674_v55  ;;  %v2063_v0 = vld [vmem:[#allocation5 + $0x90] ss:$8 sps:$4 sm:$0xff]   ;;  %v2065_v2 = vld [vmem:[#allocation5 + $0x84] ss:$8 sps:$4 sm:$0xff]   ;;  %v2069_v4 = vld [vmem:[#allocation5 + $0x80] ss:$8 sps:$4 sm:$0xff]  }
  0x62   :  { %961 = vmatpush1.bf16.msra.mxu0 %v2009_v22  ;;  %v2064_v1 = vld [vmem:[#allocation5 + $0x190] ss:$8 sps:$4 sm:$0xff]   ;;  %v2067_v3 = vld [vmem:[#allocation5 + $0x184] ss:$8 sps:$4 sm:$0xff]   ;;  %v2070_v5 = vld [vmem:[#allocation5 + $0x180] ss:$8 sps:$4 sm:$0xff]  }
  0x63   :  { %1004 = vmatpush1.bf16.msra.mxu1 %v2010_v23  ;;  %962 = vmatprep.subr.bf16.mxu0 %v2011_v24  ;;  %v2073_v6 = vld [vmem:[#allocation5 + $0x274] ss:$8 sps:$4 sm:$0xff]   ;;  %v2071_v10 = vld [vmem:[#allocation5 + $0x270] ss:$8 sps:$4 sm:$0xff]   ;;  %v2079_v12 = vld [vmem:[#allocation5 + $0x264] ss:$8 sps:$4 sm:$0xff]  }
  0x64   :  { %1005 = vmatprep.subr.bf16.mxu1 %v2013_v25  ;;  %v2076_v7 = vld [vmem:[#allocation5 + $0x374] ss:$8 sps:$4 sm:$0xff]   ;;  %v2074_v11 = vld [vmem:[#allocation5 + $0x370] ss:$8 sps:$4 sm:$0xff]   ;;  %v2082_v13 = vld [vmem:[#allocation5 + $0x364] ss:$8 sps:$4 sm:$0xff]  }
  0x65   :  { %v2077_v14 = vld [vmem:[#allocation5 + $0x260] ss:$8 sps:$4 sm:$0xff]   ;;  %v2085_v16 = vld [vmem:[#allocation5 + $0x254] ss:$8 sps:$4 sm:$0xff]   ;;  %v2083_v18 = vld [vmem:[#allocation5 + $0x250] ss:$8 sps:$4 sm:$0xff]  }
  0x66   :  { %963 = vmatpush1.bf16.msra.mxu0 %v2015_v26  ;;  %v2080_v15 = vld [vmem:[#allocation5 + $0x360] ss:$8 sps:$4 sm:$0xff]   ;;  %v2088_v17 = vld [vmem:[#allocation5 + $0x354] ss:$8 sps:$4 sm:$0xff]   ;;  %v2086_v19 = vld [vmem:[#allocation5 + $0x350] ss:$8 sps:$4 sm:$0xff]  }
  0x67   :  { %1006 = vmatpush1.bf16.msra.mxu1 %v2016_v27  ;;  %964 = vmatprep.subr.bf16.mxu0 %v2017_v28  ;;  %v2091_v20 = vld [vmem:[#allocation5 + $0x244] ss:$8 sps:$4 sm:$0xff]   ;;  %v2089_v22 = vld [vmem:[#allocation5 + $0x240] ss:$8 sps:$4 sm:$0xff]   ;;  %v2097_v24 = vld [vmem:[#allocation5 + $0x234] ss:$8 sps:$4 sm:$0xff]  }
  0x68   :  { %1007 = vmatprep.subr.bf16.mxu1 %v2019_v29  ;;  %v2094_v21 = vld [vmem:[#allocation5 + $0x344] ss:$8 sps:$4 sm:$0xff]   ;;  %v2092_v23 = vld [vmem:[#allocation5 + $0x340] ss:$8 sps:$4 sm:$0xff]   ;;  %v2100_v25 = vld [vmem:[#allocation5 + $0x334] ss:$8 sps:$4 sm:$0xff]  }
  0x69   :  { %v2095_v26 = vld [vmem:[#allocation5 + $0x230] ss:$8 sps:$4 sm:$0xff]   ;;  %v2103_v28 = vld [vmem:[#allocation5 + $0x224] ss:$8 sps:$4 sm:$0xff]   ;;  %v2128_v53 = vld [vmem:[#allocation5 + $0x3e0] ss:$8 sps:$4 sm:$0xff]  }
  0x6a   :  { %965 = vmatpush1.bf16.msra.mxu0 %v2021_v30  ;;  %v2098_v27 = vld [vmem:[#allocation5 + $0x330] ss:$8 sps:$4 sm:$0xff]   ;;  %v2106_v29 = vld [vmem:[#allocation5 + $0x324] ss:$8 sps:$4 sm:$0xff]   ;;  %v2101_v30 = vld [vmem:[#allocation5 + $0x220] ss:$8 sps:$4 sm:$0xff]  }
  0x6b   :  { %1008 = vmatpush1.bf16.msra.mxu1 %v2022_v31  ;;  %966 = vmatprep.subr.bf16.mxu0 %v2023_v32  ;;  %v2104_v31 = vld [vmem:[#allocation5 + $0x320] ss:$8 sps:$4 sm:$0xff]   ;;  %v2109_v32 = vld [vmem:[#allocation5 + $0x214] ss:$8 sps:$4 sm:$0xff]   ;;  %v2119_v48 = vld [vmem:[#allocation5 + $0x2f0] ss:$8 sps:$4 sm:$0xff]  }
  0x6c   :  { %1009 = vmatprep.subr.bf16.mxu1 %v2025_v33  ;;  %v2112_v33 = vld [vmem:[#allocation5 + $0x314] ss:$8 sps:$4 sm:$0xff]   ;;  %v2122_v49 = vld [vmem:[#allocation5 + $0x3f0] ss:$8 sps:$4 sm:$0xff]   ;;  %v2127_v50 = vld [vmem:[#allocation5 + $0x2e4] ss:$8 sps:$4 sm:$0xff]  }
  0x6d   :  { %v2130_v51 = vld [vmem:[#allocation5 + $0x3e4] ss:$8 sps:$4 sm:$0xff]   ;;  %v2136_v55 = vld [vmem:[#allocation5 + $0x3d4] ss:$8 sps:$4 sm:$0xff]  }
  0x6e   :  { %967 = vmatpush2.bf16.msra.mxu0 %v2027_v34  ;;  %v2107_v34 = vld [vmem:[#allocation5 + $0x210] ss:$8 sps:$4 sm:$0xff]  }
  0x6f   :  { %1010 = vmatpush2.bf16.msra.mxu1 %v2028_v35  ;;  %968 = vmatprep.subr.bf16.mxu0 %v2029_v36  ;;  %v2110_v35 = vld [vmem:[#allocation5 + $0x310] ss:$8 sps:$4 sm:$0xff]  }
  0x70   :  { %1011 = vmatprep.subr.bf16.mxu1 %v2031_v37  ;;  %v2465_v36 = vld [vmem:[#allocation2 + $0x10] sm:$0xff]  ;;  %v2115_v37 = vld [vmem:[#allocation5 + $0x204] ss:$8 sps:$4 sm:$0xff]  }
  0x72   :  { %969 = vmatpush2.bf16.msra.mxu0 %v2033_v38  ;;  %v2467_v38 = vld [vmem:[#allocation2 + $0x30] sm:$0xff] }
  0x73   :  { %1012 = vmatpush2.bf16.msra.mxu1 %v2034_v39  ;;  %970 = vmatprep.subr.bf16.mxu0 %v2035_v40  ;;  %v2469_v39 = vld [vmem:[#allocation2 + $0x18] sm:$0xff] }
  0x74   :  { %1013 = vmatprep.subr.bf16.mxu1 %v2037_v41  ;;  %v2471_v40 = vld [vmem:[#allocation2 + $0x38] sm:$0xff]  ;;  %v2118_v41 = vld [vmem:[#allocation5 + $0x304] ss:$8 sps:$4 sm:$0xff]  }
  0x76   :  { %971 = vmatpush2.bf16.msra.mxu0 %v2039_v42  ;;  %v1676_v42 = vcombine.high %v2465_v36, %v2467_v38 }
  0x77   :  { %1014 = vmatpush2.bf16.msra.mxu1 %v2040_v43  ;;  %972 = vmatprep.subr.bf16.mxu0 %v2041_v44  ;;  %v1678_v43 = vcombine.high %v2469_v39, %v2471_v40  ;;  %v2113_v44 = vld [vmem:[#allocation5 + $0x200] ss:$8 sps:$4 sm:$0xff]  }
  0x78   :  { %1015 = vmatprep.subr.bf16.mxu1 %v2043_v45  ;;  %v2116_v45 = vld [vmem:[#allocation5 + $0x300] ss:$8 sps:$4 sm:$0xff]  }
  0x7a   :  { %973 = vmatpush2.bf16.msra.mxu0 %v2045_v46  ;;  %v2121_v46 = vld [vmem:[#allocation5 + $0x2f4] ss:$8 sps:$4 sm:$0xff]  }
  0x7b   :  { %1016 = vmatpush2.bf16.msra.mxu1 %v2046_v47  ;;  %974 = vmatprep.subr.bf16.mxu0 %v2047_v52  ;;  %v2124_v47 = vld [vmem:[#allocation5 + $0x3f4] ss:$8 sps:$4 sm:$0xff]   ;;  %v2125_v52 = vld [vmem:[#allocation5 + $0x2e0] ss:$8 sps:$4 sm:$0xff]  }
  0x7c   :  { %1017 = vmatprep.subr.bf16.mxu1 %v2049_v54  ;;  %v2133_v54 = vld [vmem:[#allocation5 + $0x2d4] ss:$8 sps:$4 sm:$0xff]  }
  0x7e   :  { %975 = vmatpush2.bf16.msra.mxu0 %v2051_v56  ;;  %v2131_v56 = vld [vmem:[#allocation5 + $0x2d0] ss:$8 sps:$4 sm:$0xff]  }
  0x7f   :  { %1018 = vmatpush2.bf16.msra.mxu1 %v2052_v57  ;;  %976 = vmatprep.subr.bf16.mxu0 %v2053_v58  ;;  %v2134_v57 = vld [vmem:[#allocation5 + $0x3d0] ss:$8 sps:$4 sm:$0xff]   ;;  %v2139_v58 = vld [vmem:[#allocation5 + $0x2c4] ss:$8 sps:$4 sm:$0xff]  }
  0x80   :  { %1019 = vmatprep.subr.bf16.mxu1 %v2055_v59  ;;  %v2142_v59 = vld [vmem:[#allocation5 + $0x3c4] ss:$8 sps:$4 sm:$0xff]  }
  0x82   :  { %977 = vmatpush2.bf16.msra.mxu0 %v2057_v60  ;;  %v2137_v60 = vld [vmem:[#allocation5 + $0x2c0] ss:$8 sps:$4 sm:$0xff]  }
  0x83   :  { %1020 = vmatpush2.bf16.msra.mxu1 %v2058_v61  ;;  %978 = vmatprep.subr.bf16.mxu0 %v2059_v62  ;;  %v2140_v61 = vld [vmem:[#allocation5 + $0x3c0] ss:$8 sps:$4 sm:$0xff]   ;;  %v2145_v62 = vld [vmem:[#allocation5 + $0x2b4] ss:$8 sps:$4 sm:$0xff]  }
  0x84   :  { %1021 = vmatprep.subr.bf16.mxu1 %v2061_v63  ;;  %v2148_v63 = vld [vmem:[#allocation5 + $0x3b4] ss:$8 sps:$4 sm:$0xff]  }
  0x86   :  { %979 = vmatpush2.bf16.msra.mxu0 %v2063_v0  ;;  %v2143_v0 = vld [vmem:[#allocation5 + $0x2b0] ss:$8 sps:$4 sm:$0xff]  }
  0x87   :  { %1022 = vmatpush2.bf16.msra.mxu1 %v2064_v1  ;;  %980 = vmatprep.subr.bf16.mxu0 %v2065_v2  ;;  %v2146_v1 = vld [vmem:[#allocation5 + $0x3b0] ss:$8 sps:$4 sm:$0xff]   ;;  %v2151_v2 = vld [vmem:[#allocation5 + $0x2a4] ss:$8 sps:$4 sm:$0xff]  }
  0x88   :  { %1023 = vmatprep.subr.bf16.mxu1 %v2067_v3  ;;  %v2154_v3 = vld [vmem:[#allocation5 + $0x3a4] ss:$8 sps:$4 sm:$0xff]  }
  0x8a   :  { %981 = vmatpush2.bf16.msra.mxu0 %v2069_v4  ;;  %v2149_v4 = vld [vmem:[#allocation5 + $0x2a0] ss:$8 sps:$4 sm:$0xff]  }
  0x8b   :  { %1024 = vmatpush2.bf16.msra.mxu1 %v2070_v5  ;;  %1036 = vmatprep.subr.bf16.mxu0 %v2073_v6  ;;  %v2152_v5 = vld [vmem:[#allocation5 + $0x3a0] ss:$8 sps:$4 sm:$0xff]   ;;  %v2157_v6 = vld [vmem:[#allocation5 + $0x294] ss:$8 sps:$4 sm:$0xff]  }
  0x8c   :  { %1079 = vmatprep.subr.bf16.mxu1 %v2076_v7  ;;  %v2160_v7 = vld [vmem:[#allocation5 + $0x394] ss:$8 sps:$4 sm:$0xff]  }
  0x8d   :  { %983 = vmatmul.mubr.bf16.vlgmr.msra.gmra.mxu0 %v1671_v8  ;;  %v2155_v8 = vld [vmem:[#allocation5 + $0x290] ss:$8 sps:$4 sm:$0xff]  }
  0x8e   :  { %1026 = vmatmul.mubr.bf16.vlgmr.msra.gmra.mxu1 %v1673_v9  ;;  %1037 = vmatpush1.bf16.msra.mxu0 %v2071_v10  ;;  %v2158_v9 = vld [vmem:[#allocation5 + $0x390] ss:$8 sps:$4 sm:$0xff]   ;;  %v2163_v10 = vld [vmem:[#allocation5 + $0x284] ss:$8 sps:$4 sm:$0xff]  }
  0x8f   :  { %1080 = vmatpush1.bf16.msra.mxu1 %v2074_v11  ;;  %1038 = vmatprep.subr.bf16.mxu0 %v2079_v12  ;;  %v2166_v11 = vld [vmem:[#allocation5 + $0x384] ss:$8 sps:$4 sm:$0xff]   ;;  %v2161_v12 = vld [vmem:[#allocation5 + $0x280] ss:$8 sps:$4 sm:$0xff]  }
  0x90   :  { %1081 = vmatprep.subr.bf16.mxu1 %v2082_v13  ;;  %1068 = vmatprep.mubr.bf16.mxu0 %v1676_v42  ;;  %v2164_v13 = vld [vmem:[#allocation5 + $0x380] ss:$8 sps:$4 sm:$0xff]  }
  0x91   :  { %1111 = vmatprep.mubr.bf16.mxu1 %v1678_v43  ;;  %v258_v42 = vld [vmem:[%s2534_s2] sm:$0x3] }
  0x92   :  { %1039 = vmatpush1.bf16.msra.mxu0 %v2077_v14  ;;  %v1675_v14 = vcombine.low %v2465_v36, %v2467_v38  ;;  %v2186_v36 = vld [vmem:[#allocation8 + $0x20] sm:$0xff]  }
  0x93   :  { %1082 = vmatpush1.bf16.msra.mxu1 %v2080_v15  ;;  %1040 = vmatprep.subr.bf16.mxu0 %v2085_v16  ;;  %v1677_v15 = vcombine.low %v2469_v39, %v2471_v40  ;;  %v2167_v16 = vld [vmem:[#allocation7 + $0x78] sm:$0xff]  }
  0x94   :  { %1083 = vmatprep.subr.bf16.mxu1 %v2088_v17  ;;  %v2168_v17 = vld [vmem:[#allocation7 + $0x38] sm:$0xff]  }
  0x96   :  { %1041 = vmatpush1.bf16.msra.mxu0 %v2083_v18  ;;  %v2169_v18 = vld [vmem:[#allocation7 + $0x70] sm:$0xff]  }
  0x97   :  { %1084 = vmatpush1.bf16.msra.mxu1 %v2086_v19  ;;  %1042 = vmatprep.subr.bf16.mxu0 %v2091_v20  ;;  %v2170_v19 = vld [vmem:[#allocation7 + $0x30] sm:$0xff]   ;;  %v2171_v20 = vld [vmem:[#allocation7 + $0x68] sm:$0xff]  }
  0x98   :  { %1085 = vmatprep.subr.bf16.mxu1 %v2094_v21  ;;  %v2172_v21 = vld [vmem:[#allocation7 + $0x28] sm:$0xff]  }
  0x9a   :  { %1043 = vmatpush1.bf16.msra.mxu0 %v2089_v22  ;;  %v2173_v22 = vld [vmem:[#allocation7 + $0x60] sm:$0xff]  }
  0x9b   :  { %1086 = vmatpush1.bf16.msra.mxu1 %v2092_v23  ;;  %1044 = vmatprep.subr.bf16.mxu0 %v2097_v24  ;;  %v2174_v23 = vld [vmem:[#allocation7 + $0x20] sm:$0xff]   ;;  %v2175_v24 = vld [vmem:[#allocation7 + $0x58] sm:$0xff]  }
  0x9c   :  { %1087 = vmatprep.subr.bf16.mxu1 %v2100_v25  ;;  %v2176_v25 = vld [vmem:[#allocation7 + $0x18] sm:$0xff]  }
  0x9e   :  { %1045 = vmatpush1.bf16.msra.mxu0 %v2095_v26  ;;  %v2177_v26 = vld [vmem:[#allocation7 + $0x50] sm:$0xff]  }
  0x9f   :  { %1088 = vmatpush1.bf16.msra.mxu1 %v2098_v27  ;;  %1046 = vmatprep.subr.bf16.mxu0 %v2103_v28  ;;  %v2178_v27 = vld [vmem:[#allocation7 + $0x10] sm:$0xff]   ;;  %v2179_v28 = vld [vmem:[#allocation7 + $0x48] sm:$0xff]  }
  0xa0   :  { %1089 = vmatprep.subr.bf16.mxu1 %v2106_v29  ;;  %v2180_v29 = vld [vmem:[#allocation7 + $0x8] sm:$0xff]  }
  0xa2   :  { %1047 = vmatpush1.bf16.msra.mxu0 %v2101_v30  ;;  %v2181_v30 = vld [vmem:[#allocation7 + $0x40] sm:$0xff]  }
  0xa3   :  { %1090 = vmatpush1.bf16.msra.mxu1 %v2104_v31  ;;  %1048 = vmatprep.subr.bf16.mxu0 %v2109_v32  ;;  %v2182_v31 = vld [vmem:[#allocation7] sm:$0xff]   ;;  %v2183_v32 = vld [vmem:[#allocation8 + $0x38] sm:$0xff]  }
  0xa4   :  { %1091 = vmatprep.subr.bf16.mxu1 %v2112_v33  ;;  %v2369_v33 = vmov 0.0  }
  0xa6   :  { %1049 = vmatpush1.bf16.msra.mxu0 %v2107_v34  ;;  %v2184_v34 = vld [vmem:[#allocation8 + $0x30] sm:$0xff]  }
  0xa7   :  { %1092 = vmatpush1.bf16.msra.mxu1 %v2110_v35  ;;  %1050 = vmatprep.subr.bf16.mxu0 %v2115_v37  ;;  %v2185_v35 = vld [vmem:[#allocation8 + $0x28] sm:$0xff]   ;;  %v260_v37 = vlaneseq }
  0xa8   :  { %1093 = vmatprep.subr.bf16.mxu1 %v2118_v41 }
  0xa9   :  { %v261_v38 = vshrl.u32 %v260_v37, 7 }
  0xaa   :  { %1051 = vmatpush1.bf16.msra.mxu0 %v2113_v44 }
  0xab   :  { %1094 = vmatpush1.bf16.msra.mxu1 %v2116_v45  ;;  %1052 = vmatprep.subr.bf16.mxu0 %v2121_v46  ;;  %v266_v41 = vsub.s32 1, %v261_v38  ;;  %v262_v43 = vsub.s32 0, %v261_v38 }
  0xac   :  { %1095 = vmatprep.subr.bf16.mxu1 %v2124_v47 }
  0xad   :  { %v267_v46 = vrot.slane %v258_v42, %v266_v41  ;;  %v263_v47 = vrot.slane %v258_v42, %v262_v43  ;;  %v2197_v41 = vld [vmem:[#allocation10 + $0x8] sm:$0xff]   ;;  %v2198_v42 = vld [vmem:[#allocation10] sm:$0xff]   ;;  %v2199_v43 = vld [vmem:[#allocation11 + $0x38] sm:$0xff]  }
  0xae   :  { %1053 = vmatpush2.bf16.msra.mxu0 %v2119_v48 }
  0xaf   :  { %1096 = vmatpush2.bf16.msra.mxu1 %v2122_v49  ;;  %1054 = vmatprep.subr.bf16.mxu0 %v2127_v50 }
  0xb0   :  { %1097 = vmatprep.subr.bf16.mxu1 %v2130_v51 }
  0xb2   :  { %1055 = vmatpush2.bf16.msra.mxu0 %v2125_v52 }
  0xb3   :  { %1098 = vmatpush2.bf16.msra.mxu1 %v2128_v53  ;;  %1056 = vmatprep.subr.bf16.mxu0 %v2133_v54 }
  0xb4   :  { %1099 = vmatprep.subr.bf16.mxu1 %v2136_v55 }
  0xb6   :  { %1057 = vmatpush2.bf16.msra.mxu0 %v2131_v56 }
  0xb7   :  { %1100 = vmatpush2.bf16.msra.mxu1 %v2134_v57  ;;  %1058 = vmatprep.subr.bf16.mxu0 %v2139_v58 }
  0xb8   :  { %1101 = vmatprep.subr.bf16.mxu1 %v2142_v59 }
  0xba   :  { %1059 = vmatpush2.bf16.msra.mxu0 %v2137_v60 }
  0xbb   :  { %1102 = vmatpush2.bf16.msra.mxu1 %v2140_v61  ;;  %1060 = vmatprep.subr.bf16.mxu0 %v2145_v62 }
  0xbc   :  { %1103 = vmatprep.subr.bf16.mxu1 %v2148_v63 }
  0xbe   :  { %1061 = vmatpush2.bf16.msra.mxu0 %v2143_v0 }
  0xbf   :  { %1104 = vmatpush2.bf16.msra.mxu1 %v2146_v1  ;;  %1062 = vmatprep.subr.bf16.mxu0 %v2151_v2 }
  0xc0   :  { %1105 = vmatprep.subr.bf16.mxu1 %v2154_v3 }
  0xc2   :  { %1063 = vmatpush2.bf16.msra.mxu0 %v2149_v4 }
  0xc3   :  { %1106 = vmatpush2.bf16.msra.mxu1 %v2152_v5  ;;  %1064 = vmatprep.subr.bf16.mxu0 %v2157_v6 }
  0xc4   :  { %1107 = vmatprep.subr.bf16.mxu1 %v2160_v7 }
  0xc6   :  { %1065 = vmatpush2.bf16.msra.mxu0 %v2155_v8 }
  0xc7   :  { %1108 = vmatpush2.bf16.msra.mxu1 %v2158_v9  ;;  %1066 = vmatprep.subr.bf16.mxu0 %v2163_v10 }
  0xc8   :  { %1109 = vmatprep.subr.bf16.mxu1 %v2166_v11 }
  0xca   :  { %1067 = vmatpush2.bf16.msra.mxu0 %v2161_v12 }
  0xcb   :  { %1110 = vmatpush2.bf16.msra.mxu1 %v2164_v13  ;;  %1851 = vmatprep.subr.bf16.mxu0 %v2167_v16 }
  0xcc   :  { %1900 = vmatprep.subr.bf16.mxu1 %v2369_v33 }
  0xcd   :  { %1069 = vmatmul.mubr.bf16.vlgmr.msra.gmra.mxu0 %v1675_v14 }
  0xce   :  { %1112 = vmatmul.mubr.bf16.vlgmr.msra.gmra.mxu1 %v1677_v15  ;;  %1852 = vmatpush3.bf16.msra.mxu0 %v2168_v17 }
  0xcf   :  { %1853 = vmatprep.subr.bf16.mxu0 %v2169_v18  ;;  %1901 = vmatpush3.bf16.msra.mxu1 %v2183_v32  ;;  %v2187_v18 = vld [vmem:[#allocation8 + $0x18] sm:$0xff]  }
  0xd0   :  { %1902 = vmatprep.subr.bf16.mxu1 %v2369_v33  ;;  %1916 = vmatprep.mubr.msk.bf16.mxu1 %vm2370_vm0, %v2369_v33 }
  0xd2   :  { %1854 = vmatpush3.bf16.msra.mxu0 %v2170_v19  ;;  %v2188_v19 = vld [vmem:[#allocation8 + $0x10] sm:$0xff]  }
  0xd3   :  { %1855 = vmatprep.subr.bf16.mxu0 %v2171_v20  ;;  %1903 = vmatpush3.bf16.msra.mxu1 %v2184_v34  ;;  %v2189_v20 = vld [vmem:[#allocation8 + $0x8] sm:$0xff]  }
  0xd4   :  { %1904 = vmatprep.subr.bf16.mxu1 %v2369_v33 }
  0xd6   :  { %1856 = vmatpush3.bf16.msra.mxu0 %v2172_v21  ;;  %v2190_v21 = vld [vmem:[#allocation8] sm:$0xff]  }
  0xd7   :  { %1857 = vmatprep.subr.bf16.mxu0 %v2173_v22  ;;  %1905 = vmatpush3.bf16.msra.mxu1 %v2185_v35  ;;  %v2191_v22 = vld [vmem:[#allocation10 + $0x38] sm:$0xff]  }
  0xd8   :  { %1906 = vmatprep.subr.bf16.mxu1 %v2369_v33 }
  0xda   :  { %1858 = vmatpush3.bf16.msra.mxu0 %v2174_v23  ;;  %v2192_v23 = vld [vmem:[#allocation10 + $0x30] sm:$0xff]  }
  0xdb   :  { %1859 = vmatprep.subr.bf16.mxu0 %v2175_v24  ;;  %1907 = vmatpush3.bf16.msra.mxu1 %v2186_v36  ;;  %v2193_v24 = vld [vmem:[#allocation10 + $0x28] sm:$0xff]  }
  0xdc   :  { %1908 = vmatprep.subr.bf16.mxu1 %v2369_v33 }
  0xde   :  { %1860 = vmatpush3.bf16.msra.mxu0 %v2176_v25  ;;  %v2194_v25 = vld [vmem:[#allocation10 + $0x20] sm:$0xff]  }
  0xdf   :  { %1861 = vmatprep.subr.bf16.mxu0 %v2177_v26  ;;  %1909 = vmatpush3.bf16.msra.mxu1 %v2187_v18  ;;  %v2195_v26 = vld [vmem:[#allocation10 + $0x18] sm:$0xff]  }
  0xe0   :  { %1910 = vmatprep.subr.bf16.mxu1 %v2369_v33 }
  0xe2   :  { %1862 = vmatpush3.bf16.msra.mxu0 %v2178_v27 }
  0xe3   :  { %1863 = vmatprep.subr.bf16.mxu0 %v2179_v28  ;;  %1911 = vmatpush3.bf16.msra.mxu1 %v2188_v19 }
  0xe4   :  { %1912 = vmatprep.subr.bf16.mxu1 %v2369_v33 }
  0xe6   :  { %1864 = vmatpush3.bf16.msra.mxu0 %v2180_v29 }
  0xe7   :  { %1865 = vmatprep.subr.bf16.mxu0 %v2181_v30  ;;  %1913 = vmatpush3.bf16.msra.mxu1 %v2189_v20  ;;  %v1807_v30 = vld [vmem:[%s2536_s4] ss:$0 sm:$0xff] }
  0xe8   :  { %1914 = vmatprep.subr.bf16.mxu1 %v2369_v33 }
  0xea   :  { %1866 = vmatpush3.bf16.msra.mxu0 %v2182_v31 }
  0xeb   :  { %1920 = vmatprep.subr.bf16.mxu0 %v2369_v33  ;;  %1915 = vmatpush3.bf16.msra.mxu1 %v2190_v21 }
  0xec   :  { %1940 = vmatprep.subr.bf16.mxu1 %v2369_v33 }
 0x14d   :  { %v984_v39 = vpop.f32.mrf.mxu0 }
 0x14e   :  { %v1027_v40 = vpop.f32.mrf.mxu1  ;;  %v985_v51 = vadd.f32 %v984_v39, %v263_v47 }
 0x14f   :  { %v986_v44 = vpop.f32.mrf.mxu0 }
 0x150   :  { %v1029_v45 = vpop.f32.mrf.mxu1  ;;  %v987_v50 = vadd.f32 %v986_v44, %v267_v46  ;;  %v1028_v59 = vadd.f32 %v1027_v40, %v985_v51  ;;  %v2196_v40 = vld [vmem:[#allocation10 + $0x10] sm:$0xff]  }
 0x151   :  { %v988_v48 = vpop.f32.mrf.mxu0  ;;  %v2200_v44 = vld [vmem:[#allocation11 + $0x30] sm:$0xff]  }
 0x152   :  { %v1031_v49 = vpop.f32.mrf.mxu1  ;;  %v989_v54 = vadd.f32 %v988_v48, %v263_v47  ;;  %v1030_v57 = vadd.f32 %v1029_v45, %v987_v50  ;;  %v2201_v45 = vld [vmem:[#allocation11 + $0x28] sm:$0xff]   ;;  %v2203_v47 = vld [vmem:[#allocation11 + $0x18] sm:$0xff]   ;;  %v1824_v48 = vld [vmem:[%s2538_s6] ss:$0 sm:$0xff] }
 0x153   :  { %v990_v52 = vpop.f32.mrf.mxu0 }
 0x154   :  { %v1033_v53 = vpop.f32.mrf.mxu1  ;;  %v991_v58 = vadd.f32 %v990_v52, %v267_v46  ;;  %v1032_v62 = vadd.f32 %v1031_v49, %v989_v54  ;;  %v2202_v46 = vld [vmem:[#allocation11 + $0x20] sm:$0xff]  }
 0x156   :  { %v1034_v3 = vadd.f32 %v1033_v53, %v991_v58  ;;  %v2204_v58 = vld [vmem:[#allocation11 + $0x10] sm:$0xff]  }
 0x18d   :  { %v1070_v55 = vpop.f32.mrf.mxu0 }
 0x18e   :  { %v1113_v56 = vpop.f32.mrf.mxu1  ;;  %v1071_v0 = vadd.f32 %v1070_v55, %v1028_v59  ;;  %v2205_v59 = vld [vmem:[#allocation11 + $0x8] sm:$0xff]  }
 0x18f   :  { %v1072_v60 = vpop.f32.mrf.mxu0 }
 0x190   :  { %v1115_v61 = vpop.f32.mrf.mxu1  ;;  %v1073_v63 = vadd.f32 %v1072_v60, %v1030_v57  ;;  %v1114_v9 = vadd.f32 %v1113_v56, %v1071_v0  ;;  %v2206_v60 = vld [vmem:[#allocation11] sm:$0xff]  }
 0x191   :  { %v1074_v1 = vpop.f32.mrf.mxu0 }
 0x192   :  { %v1117_v2 = vpop.f32.mrf.mxu1  ;;  %v1075_v4 = vadd.f32 %v1074_v1, %v1032_v62  ;;  %v1116_v6 = vadd.f32 %v1115_v61, %v1073_v63  ;;  %v1122_v15 = vmax.f32 %v1114_v9, 0.0  ;;  %v1833_v61 = vld [vmem:[%s2540_s8] ss:$0 sm:$0xff]  ;;  %s2327_s8 = scalar_lea.vmem %s1657_s18, 256 }
 0x193   :  { %v1076_v5 = vpop.f32.mrf.mxu0  ;;  %p2328_p2 = scmp.ne.s32.totalorder %s1657_s18, %s2327_s8  ;;  %p2333_p4 = scmp.lt.s32.totalorder %s2327_s8, %s2327_s8 }
 0x194   :  { %v1118_v7 = vadd.f32 %v1117_v2, %v1075_v4  ;;  %v1077_v8 = vadd.f32 %v1076_v5, %v1034_v3  ;;  %v1119_v10 = vpop.f32.mrf.mxu1  ;;  %v1123_v13 = vmax.f32 %v1116_v6, 0.0 }
 0x195   :  { %p2334_p5 = por %p2333_p4, %p2332_p3 }
 0x196   :  { %v1120_v11 = vadd.f32 %v1119_v10, %v1077_v8  ;;  %v1124_v12 = vmax.f32 %v1118_v7, 0.0 }
 0x197   :  { %p2335_p6 = pnand %p2334_p5, %p2328_p2 }
 0x198   :  { %v1125_v14 = vmax.f32 %v1120_v11, 0.0  ;;  %v1126_v17 = vpack.c.bf16 %v1124_v12, %v1122_v15 }
 0x19a   :  { %v1127_v16 = vpack.c.bf16 %v1125_v14, %v1123_v13 }
 0x19c   :  { %1295 = vmatprep.mubr.bf16.mxu0 %v1127_v16 }
 0x19d   :  { %1296 = vmatmul.mubr.bf16.vlgmr.msra.gmra.mxu0 %v1126_v17 }
 0x19e   :  { %1936 = vmatprep.mubr.msk.bf16.mxu0 %vm2370_vm0, %v2369_v33  ;;  %1921 = vmatpush3.bf16.msra.mxu0 %v2191_v22 }
 0x19f   :  { %1922 = vmatprep.subr.bf16.mxu0 %v2369_v33 }
 0x1a2   :  { %1923 = vmatpush3.bf16.msra.mxu0 %v2192_v23 }
 0x1a3   :  { %1924 = vmatprep.subr.bf16.mxu0 %v2369_v33 }
 0x1a6   :  { %1925 = vmatpush3.bf16.msra.mxu0 %v2193_v24 }
 0x1a7   :  { %1926 = vmatprep.subr.bf16.mxu0 %v2369_v33 }
 0x1aa   :  { %1927 = vmatpush3.bf16.msra.mxu0 %v2194_v25 }
 0x1ab   :  { %1928 = vmatprep.subr.bf16.mxu0 %v2369_v33 }
 0x1ae   :  { %1929 = vmatpush3.bf16.msra.mxu0 %v2195_v26 }
 0x1af   :  { %1930 = vmatprep.subr.bf16.mxu0 %v2369_v33 }
 0x1b2   :  { %1931 = vmatpush3.bf16.msra.mxu0 %v2196_v40 }
 0x1b3   :  { %1932 = vmatprep.subr.bf16.mxu0 %v2369_v33 }
 0x1b6   :  { %1933 = vmatpush3.bf16.msra.mxu0 %v2197_v41 }
 0x1b7   :  { %1934 = vmatprep.subr.bf16.mxu0 %v2369_v33 }
 0x1ba   :  { %1935 = vmatpush3.bf16.msra.mxu0 %v2198_v42 }
 0x25d   :  { %v1867_v27 = vpop.f32.mrf.mxu0 }
 0x25f   :  { %v1868_v28 = vpop.f32.mrf.mxu0 }
 0x260   :  { %v1869_v29 = vadd.f32 %v1868_v28, %v1867_v27 }
 0x261   :  { %v1870_v31 = vpop.f32.mrf.mxu0 }
 0x262   :  { %v1298_v34 = vadd.f32 %v1869_v29, %v1807_v30 }
 0x263   :  { %v1871_v32 = vpop.f32.mrf.mxu0 }
 0x264   :  { %v1872_v35 = vadd.f32 %v1871_v32, %v1870_v31  ;;  %v1304_v37 = vmax.f32 %v1298_v34, 0.0 }
 0x266   :  { %v1301_v36 = vadd.f32 %v1872_v35, %v1807_v30 }
 0x268   :  { %v1305_v38 = vmax.f32 %v1301_v36, 0.0 }
 0x26a   :  { %v1306_v39 = vpack.c.bf16 %v1305_v38, %v1304_v37 }
 0x26c   :  { %1917 = vmatmul.mubr.bf16.vlgmr.msra.gmra.mxu1 %v1306_v39 }
 0x26d   :  { %1956 = vmatprep.mubr.msk.bf16.mxu1 %vm2370_vm0, %v2369_v33  ;;  %1941 = vmatpush3.bf16.msra.mxu1 %v2199_v43 }
 0x26e   :  { %1942 = vmatprep.subr.bf16.mxu1 %v2369_v33 }
 0x271   :  { %1943 = vmatpush3.bf16.msra.mxu1 %v2200_v44 }
 0x272   :  { %1944 = vmatprep.subr.bf16.mxu1 %v2369_v33 }
 0x275   :  { %1945 = vmatpush3.bf16.msra.mxu1 %v2201_v45 }
 0x276   :  { %1946 = vmatprep.subr.bf16.mxu1 %v2369_v33 }
 0x279   :  { %1947 = vmatpush3.bf16.msra.mxu1 %v2202_v46 }
 0x27a   :  { %1948 = vmatprep.subr.bf16.mxu1 %v2369_v33 }
 0x27d   :  { %1949 = vmatpush3.bf16.msra.mxu1 %v2203_v47 }
 0x27e   :  { %1950 = vmatprep.subr.bf16.mxu1 %v2369_v33 }
 0x281   :  { %1951 = vmatpush3.bf16.msra.mxu1 %v2204_v58 }
 0x282   :  { %1952 = vmatprep.subr.bf16.mxu1 %v2369_v33 }
 0x285   :  { %1953 = vmatpush3.bf16.msra.mxu1 %v2205_v59 }
 0x286   :  { %1954 = vmatprep.subr.bf16.mxu1 %v2369_v33  ;;  %v1842_v33 = vld [vmem:[%s2542_s10] ss:$0 sm:$0xff] }
 0x289   :  { %1955 = vmatpush3.bf16.msra.mxu1 %v2206_v60 }
 0x32c   :  { %v1412_v49 = vpop.f32.mrf.mxu1 }
 0x32d   :  { %v1413_v51 = vadd.f32 %v1824_v48, %v1412_v49 }
 0x32e   :  { %v1918_v50 = vpop.f32.mrf.mxu1 }
 0x32f   :  { %v1419_v55 = vmax.f32 %v1413_v51, 0.0 }
 0x330   :  { %v1415_v52 = vpop.f32.mrf.mxu1 }
 0x331   :  { %v1416_v53 = vadd.f32 %v1824_v48, %v1415_v52 }
 0x332   :  { %v1919_v54 = vpop.f32.mrf.mxu1 }
 0x333   :  { %v1420_v56 = vmax.f32 %v1416_v53, 0.0 }
 0x335   :  { %v1421_v57 = vpack.c.bf16 %v1420_v56, %v1419_v55 }
 0x337   :  { %1937 = vmatmul.mubr.bf16.vlgmr.msra.gmra.mxu0 %v1421_v57 }
 0x3f7   :  { %v1527_v62 = vpop.f32.mrf.mxu0 }
 0x3f8   :  { %v1528_v0 = vadd.f32 %v1833_v61, %v1527_v62 }
 0x3f9   :  { %v1938_v63 = vpop.f32.mrf.mxu0 }
 0x3fa   :  { %v1534_v4 = vmax.f32 %v1528_v0, 0.0 }
 0x3fb   :  { %v1530_v1 = vpop.f32.mrf.mxu0 }
 0x3fc   :  { %v1531_v2 = vadd.f32 %v1833_v61, %v1530_v1 }
 0x3fd   :  { %v1939_v3 = vpop.f32.mrf.mxu0 }
 0x3fe   :  { %v1535_v5 = vmax.f32 %v1531_v2, 0.0 }
 0x400   :  { %v1536_v6 = vpack.c.bf16 %v1535_v5, %v1534_v4 }
 0x402   :  { %1957 = vmatmul.mubr.bf16.vlgmr.msra.gmra.mxu1 %v1536_v6 }
 0x4c2   :  { %v1642_v7 = vpop.f32.mrf.mxu1 }
 0x4c3   :  { %v1643_v8 = vadd.f32 %v1842_v33, %v1642_v7 }
 0x4c4   :  { %v1958_v9 = vpop.f32.mrf.mxu1 }
 0x4c5   :  { %1649 = vst [vmem:[#allocation13] sm:$0xff] %v1643_v8 }
 0x4c6   :  { %v1645_v10 = vpop.f32.mrf.mxu1 }
 0x4c7   :  { %v1646_v11 = vadd.f32 %v1842_v33, %v1645_v10 }
 0x4c8   :  { %v1959_v12 = vpop.f32.mrf.mxu1 }
 0x4c9   :  { %1650 = vst [vmem:[#allocation13 + $0x8] sm:$0xff] %v1646_v11 }
 0x4ca   :  { %2338 = shalt.err (!%p2335_p6)
}
 0x4cb   :  { %1662 = dma.vmem_to_hbm [thread:$0]  %s1657_s18, 256, %s2543_s11, [#allocation4], %s2358_s20, %s2358_s20, %s2359_s21  }
 0x4cc   :  { %2355 = dma.done.wait [#allocation4], 256  }
 0x4cd   :  { %2356 = vsyncadd [#allocation4], 4294967040 }
 0x4ce   :  { %1666 = vsyncpa [#allocation3], 1 }
 0x4cf   :  { %1667 = vsyncpa [#allocation6], 1 }
 0x4d0   :  { %1668 = vsyncpa [#allocation9], 1 }
 0x4d1   :  { %1669 = vsyncpa [#allocation12], 1 }
 0x4d2   :  { %1670 = vsyncpa [#allocation4], 1 }

</bundles_post_ra>
